<compile_context>
chip_gen: v7x
topology: tpu7x:2x2x1
jax: 0.10.0
libtpu: 0.0.40
codegen_flags: <defaults>
</compile_context>

<pallas_src>
import functools

import jax
import jax.numpy as jnp
from jax import lax
from jax.experimental import pallas as pl
from jax.experimental.pallas import tpu as pltpu


def _nprf_knrm_kernel(scal_ref, w1_ref, w2_ref, aux_ref, x_ref, g_ref, out_ref, *, D):
    # scal_ref : SMEM (2,)        [b2, bf]
    # w1_ref   : VMEM (D*K, D*H)  block-diagonal kron(I_D, w1)
    # w2_ref   : VMEM (D*H, D)    block-diagonal kron(I_D, w2)
    # aux_ref  : VMEM (2, D*H)    row 0 = b1 tiled D times; row 1 = wg*wf (first D lanes)
    # x_ref    : VMEM (B, D*K)    dd_input, contiguous flatten (doc axis stays on lanes)
    # g_ref    : VMEM (B, D)      doc_scores squeezed
    # out_ref  : VMEM (1, B)      lane-dense final scores
    b2 = scal_ref[0]
    bf = scal_ref[1]

    # hidden Linear(K->H) for all D docs at once: one MXU matmul, bias add on VPU,
    # tanh on the EUP.
    h = jnp.dot(x_ref[...], w1_ref[...], preferred_element_type=jnp.float32)   # (B, D*H)
    h = jnp.tanh(h + aux_ref[0:1, :])

    # Linear(H->1) per doc: second MXU matmul -> per-doc scores d (B, D).
    d = jnp.dot(h, w2_ref[...], preferred_element_type=jnp.float32) + b2       # (B, D)

    # doc gate (wg already folded into wfp): one (B, D) VPU multiply.
    w = d * g_ref[...]                                                          # (B, D)

    # final Linear(D->1): contract the doc axis on the MXU, producing a lane-dense
    # (1, B) row (rhs-transposed dot, like the standard q @ k^T pattern).
    wfp = aux_ref[1:2, 0:D]                                                      # (1, D)
    out = lax.dot_general(wfp, w, (((1,), (1,)), ((), ())),
                          preferred_element_type=jnp.float32) + bf               # (1, B)
    out_ref[...] = out


def prepare_params(p):
    """Pack PyTorch-equivalent params into kernel-ready arrays. Run ONCE per model
    (independent of batch size); the per-call wrapper does no parameter work."""
    K, H = p["w1"].shape                      # weights stored pre-transposed (in, out)
    D = p["wf"].shape[1]
    eye = jnp.eye(D, dtype=jnp.float32)
    w1blk = jnp.kron(eye, p["w1"].astype(jnp.float32))                # (D*K, D*H)
    w2blk = jnp.kron(eye, p["w2"].astype(jnp.float32))                # (D*H, D)
    b1t = jnp.tile(p["b1"].reshape(-1).astype(jnp.float32), D)        # (D*H,)
    wfp = (p["wg"][0, 0] * p["wf"][0]).astype(jnp.float32)            # (D,) = wg*wf folded
    wfp_pad = jnp.zeros((D * H,), jnp.float32).at[:D].set(wfp)
    aux = jnp.stack([b1t, wfp_pad])                                    # (2, D*H)
    scal = jnp.array([p["b2"][0, 0], p["bf"][0, 0]], jnp.float32)      # (2,)
    return {"w1blk": w1blk, "w2blk": w2blk, "aux": aux, "scal": scal}


def nprf_knrm_forward(dd_input, doc_scores, prep):
    B, D, K = dd_input.shape
    DK = D * K
    DH = prep["w1blk"].shape[1]

    # Only free, contiguous relayouts per call (no transpose / concat HLOs).
    x2 = dd_input.reshape(B, DK).astype(jnp.float32)       # (B, D*K)
    g = doc_scores.reshape(B, D).astype(jnp.float32)       # (B, D)

    cost = pl.CostEstimate(
        flops=2 * B * DK * DH + 2 * B * DH * D + 2 * B * D + 3 * B * DH,
        transcendentals=B * DH,
        bytes_accessed=4 * (B * DK + B * D + DK * DH + DH * D + 2 * DH + 2 + B),
    )

    out = pl.pallas_call(
        functools.partial(_nprf_knrm_kernel, D=D),
        out_shape=jax.ShapeDtypeStruct((1, B), jnp.float32),   # lane-dense output
        in_specs=[
            pl.BlockSpec(memory_space=pltpu.MemorySpace.SMEM),  # scal [b2, bf]
            pl.BlockSpec(memory_space=pltpu.MemorySpace.VMEM),  # w1blk
            pl.BlockSpec(memory_space=pltpu.MemorySpace.VMEM),  # w2blk
            pl.BlockSpec(memory_space=pltpu.MemorySpace.VMEM),  # aux (b1 tiled | wg*wf)
            pl.BlockSpec(memory_space=pltpu.MemorySpace.VMEM),  # x2
            pl.BlockSpec(memory_space=pltpu.MemorySpace.VMEM),  # g
        ],
        out_specs=pl.BlockSpec(memory_space=pltpu.MemorySpace.VMEM),
        cost_estimate=cost,
    )(prep["scal"], prep["w1blk"], prep["w2blk"], prep["aux"], x2, g)

    return out.reshape(B, 1)   # free relayout; matches the PyTorch module's output shape


def init_params(key, kernel_size=11, hidden_size=11, nb_supervised_doc=10):
    """Deterministic init mirroring the torch module's _init_weights:
    weights ~ U(-0.1, 0.1) (gate: U(-0.01, 0.01)); biases keep torch Linear default
    U(-1/sqrt(fan_in), 1/sqrt(fan_in)).  Weights stored pre-transposed (in, out)."""
    ks = jax.random.split(key, 7)
    K, H, D = kernel_size, hidden_size, nb_supervised_doc
    u = lambda k, s, lo, hi: jax.random.uniform(k, s, jnp.float32, lo, hi)
    return {
        "w1": u(ks[0], (K, H), -0.1, 0.1),
        "b1": u(ks[1], (1, H), -1.0 / (K ** 0.5), 1.0 / (K ** 0.5)),
        "w2": u(ks[2], (H, 1), -0.1, 0.1),
        "b2": u(ks[3], (1, 1), -1.0 / (H ** 0.5), 1.0 / (H ** 0.5)),
        "wg": u(ks[4], (1, 1), -0.01, 0.01),
        "wf": u(ks[5], (1, D), -0.1, 0.1),
        "bf": u(ks[6], (1, 1), -1.0 / (D ** 0.5), 1.0 / (D ** 0.5)),
    }


def nprf_knrm_reference(dd_input, doc_scores, p):
    """Pure-JAX reference of the PyTorch forward."""
    h = jnp.tanh(jnp.einsum("bdk,kh->bdh", dd_input, p["w1"]) + p["b1"][0])
    d_scores = jnp.einsum("bdh,ho->bdo", h, p["w2"])[..., 0] + p["b2"][0, 0]   # (B, D)
    doc_weights = (doc_scores * p["wg"][0, 0])[..., 0]                         # (B, D)
    weighted = d_scores * doc_weights                                          # (B, D)
    return weighted @ p["wf"].T + p["bf"]                                      # (B, 1)


if __name__ == "__main__":
    B, D, K, H = 8, 10, 11, 11   # batch, nb_supervised_doc, kernel_size, hidden_size

    key = jax.random.PRNGKey(0)
    k_dd, k_ds, k_p = jax.random.split(key, 3)
    dd_input = jax.random.normal(k_dd, (B, D, K), jnp.float32)
    doc_scores = jax.random.normal(k_ds, (B, D, 1), jnp.float32)
    params = init_params(k_p, kernel_size=K, hidden_size=H, nb_supervised_doc=D)

    prep = prepare_params(params)          # parameter packing: once, outside the call path
    fwd = jax.jit(nprf_knrm_forward)       # per-call path: kernel + two free reshapes

    out = jax.block_until_ready(fwd(dd_input, doc_scores, prep))
    ref = nprf_knrm_reference(dd_input, doc_scores, params)

    assert out.shape == (B, 1), out.shape
    # Tolerance accounts for MXU f32 multi-pass matmul and the EUP tanh approximation.
    assert jnp.allclose(out, ref, rtol=1e-3, atol=1e-4), (out, ref)
    print("KERNEL_OK")
</pallas_src>

<mosaic_0001>
module attributes {stable_mosaic.version = 11 : i64} {
  func.func @_nprf_knrm_kernel(%arg0: memref<2xf32, #tpu.memory_space<smem>>, %arg1: memref<110x110xf32, #tpu.memory_space<vmem>>, %arg2: memref<110x10xf32, #tpu.memory_space<vmem>>, %arg3: memref<2x110xf32, #tpu.memory_space<vmem>>, %arg4: memref<8x110xf32, #tpu.memory_space<vmem>>, %arg5: memref<8x10xf32, #tpu.memory_space<vmem>>, %arg6: memref<1x8xf32, #tpu.memory_space<vmem>>) attributes {dimension_semantics = [], scalar_prefetch = 0 : i64, scratch_operands = 0 : i64, tpu.core_type = #tpu.core_type<tc>} {
    %c0 = arith.constant 0 : index
    %0 = memref.load %arg0[%c0] : memref<2xf32, #tpu.memory_space<smem>>
    %c1 = arith.constant 1 : index
    %1 = memref.load %arg0[%c1] : memref<2xf32, #tpu.memory_space<smem>>
    %c0_0 = arith.constant 0 : index
    %c0_1 = arith.constant 0 : index
    %2 = vector.load %arg4[%c0_0, %c0_1] : memref<8x110xf32, #tpu.memory_space<vmem>>, vector<8x110xf32>
    %c0_2 = arith.constant 0 : index
    %c0_3 = arith.constant 0 : index
    %3 = vector.load %arg1[%c0_2, %c0_3] : memref<110x110xf32, #tpu.memory_space<vmem>>, vector<110x110xf32>
    %cst = arith.constant dense<0.000000e+00> : vector<8x110xf32>
    %4 = tpu.matmul %2, %3, %cst {dimension_numbers = #tpu.dot_dimension_numbers<[1], [0], [0], [1], [0, 0, 1, 1], [], []>} : vector<8x110xf32>, vector<110x110xf32>, vector<8x110xf32> -> vector<8x110xf32>
    %c0_4 = arith.constant 0 : index
    %c0_5 = arith.constant 0 : index
    %5 = vector.load %arg3[%c0_4, %c0_5] : memref<2x110xf32, #tpu.memory_space<vmem>>, vector<1x110xf32>
    %6 = vector.broadcast %5 : vector<1x110xf32> to vector<8x110xf32>
    %7 = arith.addf %4, %6 : vector<8x110xf32>
    %8 = math.tanh %7 : vector<8x110xf32>
    %c0_6 = arith.constant 0 : index
    %c0_7 = arith.constant 0 : index
    %9 = vector.load %arg2[%c0_6, %c0_7] : memref<110x10xf32, #tpu.memory_space<vmem>>, vector<110x10xf32>
    %cst_8 = arith.constant dense<0.000000e+00> : vector<8x10xf32>
    %10 = tpu.matmul %8, %9, %cst_8 {dimension_numbers = #tpu.dot_dimension_numbers<[1], [0], [0], [1], [0, 0, 1, 1], [], []>} : vector<8x110xf32>, vector<110x10xf32>, vector<8x10xf32> -> vector<8x10xf32>
    %11 = vector.broadcast %0 : f32 to vector<8x10xf32>
    %12 = arith.addf %10, %11 : vector<8x10xf32>
    %c0_9 = arith.constant 0 : index
    %c0_10 = arith.constant 0 : index
    %13 = vector.load %arg5[%c0_9, %c0_10] : memref<8x10xf32, #tpu.memory_space<vmem>>, vector<8x10xf32>
    %14 = arith.mulf %12, %13 : vector<8x10xf32>
    %c1_11 = arith.constant 1 : index
    %c0_12 = arith.constant 0 : index
    %15 = vector.load %arg3[%c1_11, %c0_12] : memref<2x110xf32, #tpu.memory_space<vmem>>, vector<1x10xf32>
    %cst_13 = arith.constant dense<0.000000e+00> : vector<1x8xf32>
    %16 = tpu.matmul %15, %14, %cst_13 {dimension_numbers = #tpu.dot_dimension_numbers<[1], [1], [0], [0], [0, 0, 1, 0], [], []>} : vector<1x10xf32>, vector<8x10xf32>, vector<1x8xf32> -> vector<1x8xf32>
    %17 = vector.broadcast %1 : f32 to vector<1x8xf32>
    %18 = arith.addf %16, %17 : vector<1x8xf32>
    %c0_14 = arith.constant 0 : index
    %c0_15 = arith.constant 0 : index
    %19 = vector.load %arg6[%c0_14, %c0_15] : memref<1x8xf32, #tpu.memory_space<vmem>>, vector<1x8xf32>
    tpu.vector_store %arg6[%c0_14, %c0_15], %18 {strides = array<i32>} : memref<1x8xf32, #tpu.memory_space<vmem>>, vector<1x8xf32>,
    return
  }
}

</mosaic_0001>

<bundles_post_ra>
// kernel: nprf_knrm_forward.1
= control target key start
LH: loop header
LB: loop body
LE: loop exit
PB: predicated region body
PF: predicated region fallthrough
CT: control target
= control target key end

     0   :  { %11 = vsyncpa [#allocation4], 0  ;;  %s703_s0 = inlined_call_operand.vmem [shape: f32[2], index: 0, kind: input, shape index: {}]   ;;  %s704_s1 = inlined_call_operand.vmem [shape: f32[110,110], index: 1, kind: input, shape index: {}]   ;;  %s705_s2 = inlined_call_operand.vmem [shape: f32[110,10], index: 2, kind: input, shape index: {}]   ;;  %s706_s3 = inlined_call_operand.vmem [shape: f32[2,110], index: 3, kind: input, shape index: {}]   ;;  %s707_s4 = inlined_call_operand.vmem [shape: f32[8,110], index: 4, kind: input, shape index: {}]   ;;  %s708_s5 = inlined_call_operand.vmem [shape: f32[8,10], index: 5, kind: input, shape index: {}]   ;;  %s709_s6 = inlined_call_operand.hbm [shape: f32[1,8], index: 6, kind: output, shape index: {}]  }
   0x1   :  { %12 = vsyncpa [#allocation3], 0  ;;  %s19_s23 = sshll.u32 %s703_s0, 4  ;;  %s20_s23 = int_to_ptr.vmem [resolvable:$true] %s19_s23 }
   0x2   :  { %s486_s24 = scalar_lea.vmem %s20_s23, 16  ;;  %p491_p1 = scmp.lt.s32.totalorder %s20_s23, %s20_s23 }
   0x3   :  { %p487_p0 = scmp.ne.s32.totalorder %s20_s23, %s486_s24  ;;  %p492_p2 = scmp.lt.s32.totalorder %s486_s24, %s486_s24 }
   0x5   :  { %p493_p3 = por %p492_p2, %p491_p1 }
   0x7   :  { %p494_p4 = pnand %p493_p3, %p487_p0 }
   0x9   :  { %497 = shalt.err (!%p494_p4)
}
   0xa   :  { %s524_s25 = smov [#allocation2]  }
   0xb   :  { %22 = dma.vmem_to_smem %s20_s23, 16, %s524_s25, [#allocation4]  }
   0xc   :  { %520 = dma.done.wait [#allocation4], 16  }
   0xd   :  { %521 = vsyncadd [#allocation4], 4294967280 }
   0xe   :  { %36 = sfence }
   0xf   :  { %v40_v0 = vld [vmem:[%s704_s1] sm:$0xff]  ;;  %v41_v1 = vld [vmem:[%s704_s1 + $0x8] sm:$0xff]  ;;  %v42_v2 = vld [vmem:[%s704_s1 + $0x10] sm:$0xff]  ;;  %v525_v3 = vmov 0.0|0.0   ;;  %vm526_vm0 = vmmov 0   ;;  %v527_v6 = vmov 0.0  }
  0x10   :  { %434 = vmatprep.subr.bf16.mxu0 %v525_v3  ;;  %v435_v4 = vpack.c.bf16 %v41_v1, %v40_v0  ;;  %v43_v5 = vld [vmem:[%s704_s1 + $0x18] sm:$0xff]  ;;  %456 = vmatprep.subr.bf16.mxu1 %v525_v3  ;;  %v44_v8 = vld [vmem:[%s704_s1 + $0x20] sm:$0xff]  ;;  %v45_v9 = vld [vmem:[%s704_s1 + $0x28] sm:$0xff]  ;;  %vm63_vm1 = vcmask 1045504   ;;  %vm528_vm2 = vmmov 1   ;;  %vm59_vm4 = vcmask 900096  }
  0x11   :  { %395 = vmatprep.mubr.msk.f32.mxu0 %vm526_vm0, %v527_v6  ;;  %426 = vmatprep.mubr.msk.f32.mxu1 %vm526_vm0, %v527_v6  ;;  %v438_v7 = vpack.c.bf16 %v43_v5, %v42_v2  ;;  %v138_v10 = vld [vmem:[%s705_s2] sm:$0xff]  ;;  %v139_v11 = vld [vmem:[%s705_s2 + $0x8] sm:$0xff]  ;;  %v140_v13 = vld [vmem:[%s705_s2 + $0x10] sm:$0xff]  ;;  %v441_v15 = vpack.c.bf16 %v45_v9, %v44_v8  ;;  %s37_s9 = sld [smem:[#allocation2]]  ;;  %vm233_vm5 = vcmask 80896   ;;  %s327_s13 = sld [smem:[#allocation2 + $0x1]] }
  0x12   :  { %436 = vmatpush3.bf16.msra.mxu0 %v435_v4  ;;  %v457_v12 = vpack.c.bf16 %v139_v11, %v138_v10  ;;  %v141_v14 = vld [vmem:[%s705_s2 + $0x18] sm:$0xff]  ;;  %v46_v16 = vld [vmem:[%s704_s1 + $0x30] sm:$0xff]  ;;  %v142_v19 = vld [vmem:[%s705_s2 + $0x20] sm:$0xff]  ;;  %s529_s14 = smov [#allocation5]   ;;  %vm310_vm6 = vcmask 57344  }
  0x13   :  { %437 = vmatprep.subr.bf16.mxu0 %v525_v3  ;;  %v47_v17 = vld [vmem:[%s704_s1 + $0x38] sm:$0xff]  ;;  %v460_v18 = vpack.c.bf16 %v141_v14, %v140_v13  ;;  %v143_v20 = vld [vmem:[%s705_s2 + $0x28] sm:$0xff]  ;;  %v48_v22 = vld [vmem:[%s704_s1 + $0x40] sm:$0xff]  ;;  %s318_s15 = sshll.u32 %s529_s14, 4  ;;  %s319_s15 = int_to_ptr.vmem [resolvable:$true] %s318_s15 }
  0x14   :  { %458 = vmatpush3.bf16.msra.mxu1 %v457_v12  ;;  %v444_v21 = vpack.c.bf16 %v47_v17, %v46_v16  ;;  %v49_v23 = vld [vmem:[%s704_s1 + $0x48] sm:$0xff]  ;;  %v463_v24 = vpack.c.bf16 %v143_v20, %v142_v19  ;;  %v144_v25 = vld [vmem:[%s705_s2 + $0x30] sm:$0xff]  ;;  %v145_v26 = vld [vmem:[%s705_s2 + $0x38] sm:$0xff]  ;;  %s502_s16 = scalar_lea.vmem %s319_s15, 32  ;;  %p503_p6 = scmp.lt.s32.totalorder %s319_s15, %s319_s15 }
  0x15   :  { %459 = vmatprep.subr.bf16.mxu1 %v525_v3  ;;  %v447_v27 = vpack.c.bf16 %v49_v23, %v48_v22  ;;  %v50_v28 = vld [vmem:[%s704_s1 + $0x50] sm:$0xff]  ;;  %v51_v29 = vld [vmem:[%s704_s1 + $0x58] sm:$0xff]  ;;  %v466_v30 = vpack.c.bf16 %v145_v26, %v144_v25  ;;  %v52_v32 = vld [vmem:[%s704_s1 + $0x60] sm:$0xff] }
  0x16   :  { %439 = vmatpush3.bf16.msra.mxu0 %v438_v7  ;;  %v450_v31 = vpack.c.bf16 %v51_v29, %v50_v28  ;;  %v53_v33 = vld [vmem:[%s704_s1 + $0x68] sm:$0x3f]  ;;  %vm648_vm3 = vmpackc.low %vm63_vm1, %vm528_vm2  ;;  %v39_v36 = vld [vmem:[%s707_s4] sm:$0xff] }
  0x17   :  { %440 = vmatprep.subr.bf16.mxu0 %v525_v3  ;;  %v453_v34 = vpack.c.bf16 %v53_v33, %v52_v32  ;;  %v146_v37 = vld [vmem:[%s705_s2 + $0x40] sm:$0xff]  ;;  %v147_v38 = vld [vmem:[%s705_s2 + $0x48] sm:$0xff]  ;;  %v148_v40 = vld [vmem:[%s705_s2 + $0x50] sm:$0xff]  ;;  %v152_v51 = vstv %s37_s9 }
  0x18   :  { %461 = vmatpush3.bf16.msra.mxu1 %v460_v18  ;;  %v469_v39 = vpack.c.bf16 %v147_v38, %v146_v37  ;;  %v149_v41 = vld [vmem:[%s705_s2 + $0x58] sm:$0xff]  ;;  %v150_v43 = vld [vmem:[%s705_s2 + $0x60] sm:$0xff]  ;;  %v151_v44 = vld [vmem:[%s705_s2 + $0x68] sm:$0x3f]  ;;  %v232_v58 = vstv %s327_s13 }
  0x19   :  { %462 = vmatprep.subr.bf16.mxu1 %v525_v3  ;;  %v472_v42 = vpack.c.bf16 %v149_v41, %v148_v40  ;;  %v475_v45 = vpack.c.bf16 %v151_v44, %v150_v43  ;;  %v328_v46 = vld [vmem:[%s706_s3] ss:$0 sm:$0xff]  ;;  %v231_v57 = vld [vmem:[%s706_s3 + $0x1] sm:$0x1] }
  0x1a   :  { %442 = vmatpush3.bf16.msra.mxu0 %v441_v15  ;;  %v229_v53 = vld [vmem:[%s708_s5] sm:$0xff]  ;;  %s498_s5 = scalar_lea.vmem %s319_s15, 16 }
  0x1b   :  { %443 = vmatprep.subr.bf16.mxu0 %v525_v3  ;;  %p499_p5 = scmp.ne.s32.totalorder %s319_s15, %s498_s5  ;;  %p504_p7 = scmp.lt.s32.totalorder %s502_s16, %s498_s5 }
  0x1c   :  { %464 = vmatpush3.bf16.msra.mxu1 %v463_v24 }
  0x1d   :  { %465 = vmatprep.subr.bf16.mxu1 %v525_v3  ;;  %p505_p8 = por %p504_p7, %p503_p6 }
  0x1e   :  { %445 = vmatpush3.bf16.msra.mxu0 %v444_v21 }
  0x1f   :  { %446 = vmatprep.subr.bf16.mxu0 %v525_v3  ;;  %p506_p9 = pnand %p505_p8, %p499_p5 }
  0x20   :  { %467 = vmatpush3.bf16.msra.mxu1 %v466_v30 }
  0x21   :  { %468 = vmatprep.subr.bf16.mxu1 %v525_v3 }
  0x22   :  { %448 = vmatpush3.bf16.msra.mxu0 %v447_v27 }
  0x23   :  { %449 = vmatprep.subr.bf16.mxu0 %v525_v3 }
  0x24   :  { %470 = vmatpush3.bf16.msra.mxu1 %v469_v39 }
  0x25   :  { %471 = vmatprep.subr.bf16.mxu1 %v525_v3 }
  0x26   :  { %451 = vmatpush3.bf16.msra.mxu0 %v450_v31 }
  0x27   :  { %452 = vmatprep.subr.bf16.mxu0 %v525_v3 }
  0x28   :  { %473 = vmatpush3.bf16.msra.mxu1 %v472_v42 }
  0x29   :  { %474 = vmatprep.subr.bf16.mxu1 %v525_v3 }
  0x2a   :  { %455 = vmatpush3.bf16.msk.msra.mxu0 %vm648_vm3, %v453_v34 }
  0x2b   :  { %429 = vmatprep.subr.mxu0 %v527_v6 }
  0x2c   :  { %477 = vmatpush3.bf16.msk.msra.mxu1 %vm648_vm3, %v475_v45 }
  0x2d   :  { %396 = vmatmul.mubr.msk.f32.vlgmr.msra.gmra.mrb[0].mxu0 %vm59_vm4, %v39_v36 }
  0x2e   :  { %431 = vmatprep.mubr.msk.f32.mxu0 %vm526_vm0, %v527_v6 }
 0x100   :  { %v133_v47 = vpop.f32.mrb[0].mxu0 }
 0x101   :  { %v134_v48 = vadd.f32 %v328_v46, %v133_v47  ;;  %v397_v49 = vpop.f32.mrb[1].mxu0 }
 0x103   :  { %484 = vtanh.f32 %v134_v48 }
 0x10d   :  { %v485_v50 = vpop.eup %484 }
 0x10e   :  { %427 = vmatmul.mubr.msk.f32.vlgmr.msra.gmra.mrb[0].mxu1 %vm59_vm4, %v485_v50 }
 0x1e1   :  { %v225_v52 = vpop.f32.mrb[0].mxu1 }
 0x1e2   :  { %v226_v54 = vadd.f32 %v225_v52, %v152_v51  ;;  %v428_v55 = vpop.f32.mrb[1].mxu1 }
 0x1e4   :  { %v230_v56 = vmul.f32 %v229_v53, %v226_v54 }
 0x1e6   :  { %430 = vmatpush3.xpose.msk.msra.mxu0 %vm233_vm5, %v230_v56 }
 0x1e9   :  { %432 = vmatmul.mubr.msk.f32.vlgmr.msra.gmra.mrb[2].mxu0 %vm233_vm5, %v231_v57 }
 0x2bc   :  { %v306_v59 = vpop.f32.mrb[2].mxu0 }
 0x2bd   :  { %v307_v60 = vadd.f32 %v306_v59, %v232_v58  ;;  %v433_v61 = vpop.f32.mrb[3].mxu0 }
 0x2bf   :  { %311 = vst.msk [vmem:[#allocation5] sm:$0x1] %vm310_vm6, %v307_v60 }
 0x2c0   :  { %509 = shalt.err (!%p506_p9)
}
 0x2c1   :  { %s510_s18 = scalar_lea.hbm %s709_s6, 16 }
 0x2c2   :  { %p511_p10 = scmp.ne.s32.totalorder %s709_s6, %s510_s18  ;;  %p514_p11 = scmp.lt.u32.totalorder %s510_s18, %s709_s6 }
 0x2c4   :  { %p516_p12 = pnand %p514_p11, %p511_p10 }
 0x2c6   :  { %519 = shalt.err (!%p516_p12)
}
 0x2c7   :  { %321 = dma.vmem_to_hbm [thread:$0]  %s319_s15, 16, %s709_s6, [#allocation3]  }
 0x2c8   :  { %522 = dma.done.wait [#allocation3], 16  }
 0x2c9   :  { %523 = vsyncadd [#allocation3], 4294967280 }
 0x2ca   :  { %325 = vsyncpa [#allocation3], 1 }
 0x2cb   :  { %326 = vsyncpa [#allocation4], 1 }

</bundles_post_ra>
